<compile_context>
chip_gen: v7x
topology: tpu7x:2x2x1
jax: 0.10.0
libtpu: 0.0.40
codegen_flags: <defaults>
</compile_context>

<pallas_src>
import jax
import jax.numpy as jnp
from jax.experimental import pallas as pl
from jax.experimental.pallas import tpu as pltpu


def _round_up(x: int, m: int) -> int:
    return ((x + m - 1) // m) * m


def _mei_contrast_kernel(c_ref, x_ref, o_ref):
    """Per-channel scalar multiply on a sublane/lane-dense tile.

    c_ref: SMEM (2,)               contrast scalars (green, UV).
    x_ref: VMEM (2, rows_tile, 128) dense tile of the flattened MEI stimulus.
    o_ref: VMEM (2, rows_tile, 128) output tile.
    """
    # Each channel plane is a full (rows_tile, 128) slab: one scalar broadcast,
    # one VPU multiply per vreg, unmasked full-vreg stores.
    o_ref[0] = x_ref[0] * c_ref[0]
    o_ref[1] = x_ref[1] * c_ref[1]


def mei_across_contrasts(contrast_values, mei_stim_private, *, target_block_rows=1024):
    """Pallas implementation of MeiAcrossContrasts.forward().

    contrast_values:  (2,)            float32
    mei_stim_private: (1, 2, T, H, W) float32
    returns:          (1, 2, T, H, W) float32
    """
    n, c, t, h, w = mei_stim_private.shape
    assert n == 1 and c == 2, "MEI stimulus expected as (1, 2, T, H, W)"
    # PyTorch's mei.squeeze() drops ALL singleton dims; if T/H/W == 1 the torch
    # broadcast changes the output shape.  We only support the standard case.
    assert t > 1 and h > 1 and w > 1, "T, H, W must be > 1 (squeeze() edge case)"

    dtype = mei_stim_private.dtype
    L = t * h * w
    x_flat = mei_stim_private.reshape(c, L)

    # Pad flattened length to a multiple of 128 lanes, view as (2, R, 128).
    Lp = _round_up(L, 128)
    if Lp != L:
        x_flat = jnp.pad(x_flat, ((0, 0), (0, Lp - L)))
    R = Lp // 128

    # Rows per block: multiple of 8 sublanes, ~1 MiB per block
    # (2 * 1024 * 128 * 4 B), capped at the whole (8-aligned) array so small
    # inputs run as a single grid step.
    rows_tile = min(_round_up(R, 8), target_block_rows)
    R_pad = _round_up(R, rows_tile)

    x3 = x_flat.reshape(c, R, 128)
    if R_pad != R:
        x3 = jnp.pad(x3, ((0, 0), (0, R_pad - R), (0, 0)))

    grid = (R_pad // rows_tile,)

    out3 = pl.pallas_call(
        _mei_contrast_kernel,
        out_shape=jax.ShapeDtypeStruct((c, R_pad, 128), dtype),
        grid=grid,
        in_specs=[
            # Contrast scalars: whole (2,) array in SMEM, no tiling.
            pl.BlockSpec(memory_space=pltpu.MemorySpace.SMEM),
            # Stimulus: dense (2, rows_tile, 128) tiles along the row axis.
            pl.BlockSpec((c, rows_tile, 128), lambda i: (0, i, 0)),
        ],
        out_specs=pl.BlockSpec((c, rows_tile, 128), lambda i: (0, i, 0)),
        compiler_params=pltpu.CompilerParams(
            dimension_semantics=("parallel",),  # megacore-shardable on v7x
        ),
    )(contrast_values, x3)

    out_flat = out3.reshape(c, R_pad * 128)[:, :L]
    return out_flat.reshape(n, c, t, h, w)


def mei_across_contrasts_ref(contrast_values, mei_stim_private):
    """Pure-JAX reference mirroring the PyTorch forward exactly."""
    ones = jnp.ones_like(mei_stim_private[:, 0, ...])
    stacked = jnp.stack(
        [ones * contrast_values[0], ones * contrast_values[1]], axis=1
    )
    return stacked * jnp.squeeze(mei_stim_private)


if __name__ == "__main__":
    key = jax.random.PRNGKey(0)
    k1, k2, k3 = jax.random.split(key, 3)

    # Module "parameters": 2 contrast scalars + a small (1, 2, T, H, W) MEI.
    contrast_values = jax.random.normal(k1, (2,), dtype=jnp.float32)
    mei_stim_private = jax.random.normal(k2, (1, 2, 8, 16, 16), dtype=jnp.float32)

    out = mei_across_contrasts(contrast_values, mei_stim_private)
    out = jax.block_until_ready(out)

    ref = mei_across_contrasts_ref(contrast_values, mei_stim_private)
    assert out.shape == ref.shape == (1, 2, 8, 16, 16)
    assert jnp.allclose(out, ref, atol=1e-6, rtol=1e-6)

    # Ragged (non-128-divisible) spatial size exercises the padding path.
    mei_ragged = jax.random.normal(k3, (1, 2, 3, 11, 13), dtype=jnp.float32)
    out2 = jax.block_until_ready(mei_across_contrasts(contrast_values, mei_ragged))
    ref2 = mei_across_contrasts_ref(contrast_values, mei_ragged)
    assert out2.shape == ref2.shape == (1, 2, 3, 11, 13)
    assert jnp.allclose(out2, ref2, atol=1e-6, rtol=1e-6)

    print("KERNEL_OK")
</pallas_src>

<mosaic_0001>
module attributes {stable_mosaic.version = 11 : i64} {
  func.func @_mei_contrast_kernel(%arg0: i32, %arg1: memref<2xf32, #tpu.memory_space<smem>>, %arg2: memref<2x16x128xf32, #tpu.memory_space<vmem>>, %arg3: memref<2x16x128xf32, #tpu.memory_space<vmem>>) attributes {dimension_semantics = [#tpu.dimension_semantics<parallel>], iteration_bounds = array<i64: 1>, scalar_prefetch = 0 : i64, scratch_operands = 0 : i64, tpu.core_type = #tpu.core_type<tc>, window_params = [{transform_indices = @transform_0, window_bounds = array<i64: 2>}, {transform_indices = @transform_1, window_bounds = array<i64: 2, 16, 128>}, {transform_indices = @transform_2, window_bounds = array<i64: 2, 16, 128>}]} {
    %c0 = arith.constant 0 : index
    %c0_0 = arith.constant 0 : index
    %c0_1 = arith.constant 0 : index
    %0 = vector.load %arg2[%c0, %c0_0, %c0_1] : memref<2x16x128xf32, #tpu.memory_space<vmem>>, vector<1x16x128xf32>
    %1 = vector.shape_cast %0 : vector<1x16x128xf32> to vector<16x128xf32>
    %c0_2 = arith.constant 0 : index
    %2 = memref.load %arg1[%c0_2] : memref<2xf32, #tpu.memory_space<smem>>
    %3 = vector.broadcast %2 : f32 to vector<16x128xf32>
    %4 = arith.mulf %1, %3 : vector<16x128xf32>
    %c0_3 = arith.constant 0 : index
    %c0_4 = arith.constant 0 : index
    %c0_5 = arith.constant 0 : index
    %5 = vector.load %arg3[%c0_3, %c0_4, %c0_5] : memref<2x16x128xf32, #tpu.memory_space<vmem>>, vector<1x16x128xf32>
    %6 = vector.shape_cast %5 : vector<1x16x128xf32> to vector<16x128xf32>
    %7 = vector.shape_cast %4 : vector<16x128xf32> to vector<1x16x128xf32>
    tpu.vector_store %arg3[%c0_3, %c0_4, %c0_5], %7 {strides = array<i32>} : memref<2x16x128xf32, #tpu.memory_space<vmem>>, vector<1x16x128xf32>,
    %c1 = arith.constant 1 : index
    %c0_6 = arith.constant 0 : index
    %c0_7 = arith.constant 0 : index
    %8 = vector.load %arg2[%c1, %c0_6, %c0_7] : memref<2x16x128xf32, #tpu.memory_space<vmem>>, vector<1x16x128xf32>
    %9 = vector.shape_cast %8 : vector<1x16x128xf32> to vector<16x128xf32>
    %c1_8 = arith.constant 1 : index
    %10 = memref.load %arg1[%c1_8] : memref<2xf32, #tpu.memory_space<smem>>
    %11 = vector.broadcast %10 : f32 to vector<16x128xf32>
    %12 = arith.mulf %9, %11 : vector<16x128xf32>
    %c1_9 = arith.constant 1 : index
    %c0_10 = arith.constant 0 : index
    %c0_11 = arith.constant 0 : index
    %13 = vector.load %arg3[%c1_9, %c0_10, %c0_11] : memref<2x16x128xf32, #tpu.memory_space<vmem>>, vector<1x16x128xf32>
    %14 = vector.shape_cast %13 : vector<1x16x128xf32> to vector<16x128xf32>
    %15 = vector.shape_cast %12 : vector<16x128xf32> to vector<1x16x128xf32>
    tpu.vector_store %arg3[%c1_9, %c0_10, %c0_11], %15 {strides = array<i32>} : memref<2x16x128xf32, #tpu.memory_space<vmem>>, vector<1x16x128xf32>,
    return
  }
  func.func @transform_0(%arg0: i32) -> i32 {
    %c0_i32 = arith.constant 0 : i32
    %c0_i32_0 = arith.constant 0 : i32
    return %c0_i32 : i32
  }
  func.func @transform_1(%arg0: i32) -> (i32, i32, i32) {
    %c0_i32 = arith.constant 0 : i32
    %c0_i32_0 = arith.constant 0 : i32
    %c0_i32_1 = arith.constant 0 : i32
    return %c0_i32, %arg0, %c0_i32_0 : i32, i32, i32
  }
  func.func @transform_2(%arg0: i32) -> (i32, i32, i32) {
    %c0_i32 = arith.constant 0 : i32
    %c0_i32_0 = arith.constant 0 : i32
    %c0_i32_1 = arith.constant 0 : i32
    return %c0_i32, %arg0, %c0_i32_0 : i32, i32, i32
  }
}

</mosaic_0001>

<bundles_post_ra>
// kernel: tpu_custom_call.1
= control target key start
LH: loop header
LB: loop body
LE: loop exit
PB: predicated region body
PF: predicated region fallthrough
CT: control target
= control target key end

     0   :  { %7 = vsyncpa [#allocation5], 0  ;;  %s201_s0 = inlined_call_operand.hbm [shape: f32[2], index: 0, kind: input, shape index: {}]   ;;  %s202_s1 = inlined_call_operand.hbm [shape: f32[2,16,128], index: 1, kind: input, shape index: {}]   ;;  %s203_s2 = inlined_call_operand.hbm [shape: f32[2,16,128], index: 2, kind: output, shape index: {}]  }
   0x1   :  { %8 = vsyncpa [#allocation3], 0 }
   0x2   :  { %9 = vsyncpa [#allocation4], 0  ;;  %s79_s11 = scalar_lea.hbm %s201_s0, 16 }
   0x3   :  { %p80_p0 = scmp.ne.s32.totalorder %s201_s0, %s79_s11  ;;  %p83_p1 = scmp.lt.u32.totalorder %s79_s11, %s201_s0 }
   0x5   :  { %p85_p2 = pnand %p83_p1, %p80_p0 }
   0x7   :  { %88 = shalt.err (!%p85_p2)
}
   0x8   :  { %s139_s16 = smov [#allocation2]   ;;  %s140_s19 = smov [#allocation6]  }
   0x9   :  { %17 = dma.hbm_to_smem %s201_s0, 16, %s139_s16, [#allocation5]  }
   0xa   :  { %s23_s20 = sshll.u32 %s140_s19, 4  ;;  %s89_s23 = scalar_lea.hbm %s202_s1, 512  ;;  %s24_s20 = int_to_ptr.vmem [resolvable:$true] %s23_s20 }
   0xb   :  { %p90_p3 = scmp.ne.s32.totalorder %s202_s1, %s89_s23  ;;  %p93_p4 = scmp.lt.u32.totalorder %s89_s23, %s202_s1 }
   0xd   :  { %p95_p5 = pnand %p93_p4, %p90_p3 }
   0xf   :  { %98 = shalt.err (!%p95_p5)
}
  0x10   :  { %s99_s28 = scalar_lea.vmem %s24_s20, 512  ;;  %p104_p7 = scmp.lt.s32.totalorder %s24_s20, %s24_s20 }
  0x11   :  { %p100_p6 = scmp.ne.s32.totalorder %s24_s20, %s99_s28  ;;  %p105_p8 = scmp.lt.s32.totalorder %s99_s28, %s99_s28 }
  0x13   :  { %p106_p9 = por %p105_p8, %p104_p7 }
  0x15   :  { %p107_p10 = pnand %p106_p9, %p100_p6 }
  0x17   :  { %110 = shalt.err (!%p107_p10)
}
  0x18   :  { %s141_s0 = smov 128   ;;  %s142_s29 = smov 8  }
  0x19   :  { %29 = dma.hbm_to_vmem [thread:$0]  %s202_s1, 512, %s24_s20, [#allocation3], %s141_s0, %s141_s0, %s142_s29  }
  0x1a   :  { %133 = dma.done.wait [#allocation5], 16  }
  0x1b   :  { %134 = vsyncadd [#allocation5], 4294967280 }
  0x1c   :  { %135 = dma.done.wait [#allocation3], 512  }
  0x1d   :  { %136 = vsyncadd [#allocation3], 4294966784 }
  0x1e   :  { %36 = sfence }
  0x1f   :  { %s39_s4 = sld [smem:[#allocation2]]  ;;  %s73_s5 = sld [smem:[#allocation2 + $0x1]]  ;;  %v37_v0 = vld [vmem:[#allocation6] sm:$0xff]  ;;  %v38_v1 = vld [vmem:[#allocation6 + $0x8] sm:$0xff]  ;;  %v46_v2 = vld [vmem:[#allocation6 + $0x10] sm:$0xff] }
  0x20   :  { %v47_v3 = vld [vmem:[#allocation6 + $0x18] sm:$0xff]  ;;  %s143_s6 = smov [#allocation7]  }
  0x21   :  { %s60_s7 = sshll.u32 %s143_s6, 4  ;;  %s61_s7 = int_to_ptr.vmem [resolvable:$true] %s60_s7 }
  0x22   :  { %s111_s1 = scalar_lea.vmem %s61_s7, 512  ;;  %p116_p12 = scmp.lt.s32.totalorder %s61_s7, %s61_s7 }
  0x23   :  { %p112_p11 = scmp.ne.s32.totalorder %s61_s7, %s111_s1  ;;  %p117_p13 = scmp.lt.s32.totalorder %s111_s1, %s111_s1 }
  0x25   :  { %v40_v4 = vstv %s39_s4  ;;  %v49_v7 = vstv %s73_s5  ;;  %p118_p0 = por %p117_p13, %p116_p12 }
  0x26   :  { %v41_v5 = vmul.f32 %v40_v4, %v37_v0  ;;  %v42_v6 = vmul.f32 %v40_v4, %v38_v1  ;;  %v50_v8 = vmul.f32 %v49_v7, %v46_v2  ;;  %v51_v9 = vmul.f32 %v49_v7, %v47_v3 }
  0x27   :  { %p119_p1 = pnand %p118_p0, %p112_p11 }
  0x28   :  { %43 = vst [vmem:[#allocation7] sm:$0xff] %v41_v5  ;;  %44 = vst [vmem:[#allocation7 + $0x8] sm:$0xff] %v42_v6 }
  0x29   :  { %53 = vst [vmem:[#allocation7 + $0x10] sm:$0xff] %v50_v8  ;;  %54 = vst [vmem:[#allocation7 + $0x18] sm:$0xff] %v51_v9 }
  0x2a   :  { %122 = shalt.err (!%p119_p1)
}
  0x2b   :  { %s123_s10 = scalar_lea.hbm %s203_s2, 512 }
  0x2c   :  { %p124_p2 = scmp.ne.s32.totalorder %s203_s2, %s123_s10  ;;  %p127_p3 = scmp.lt.u32.totalorder %s123_s10, %s203_s2 }
  0x2e   :  { %p129_p4 = pnand %p127_p3, %p124_p2 }
  0x30   :  { %132 = shalt.err (!%p129_p4)
}
  0x31   :  { %66 = dma.vmem_to_hbm [thread:$0]  %s61_s7, 512, %s203_s2, [#allocation4], %s141_s0, %s141_s0, %s142_s29  }
  0x32   :  { %137 = dma.done.wait [#allocation4], 512  }
  0x33   :  { %138 = vsyncadd [#allocation4], 4294966784 }
  0x34   :  { %70 = vsyncpa [#allocation3], 1 }
  0x35   :  { %71 = vsyncpa [#allocation4], 1 }
  0x36   :  { %72 = vsyncpa [#allocation5], 1 }

</bundles_post_ra>
